<compile_context>
chip_gen: v7x
topology: tpu7x:2x2x1
jax: 0.10.0
libtpu: 0.0.40
codegen_flags: <defaults>
</compile_context>

<pallas_src>
import functools

import jax
import jax.numpy as jnp
from jax import lax
from jax.experimental import pallas as pl
from jax.experimental.pallas import tpu as pltpu

_EPS2 = 1e-24            # (torch F.normalize eps=1e-12)^2, clamp on sum-of-squares
_NEG_BIG = -1e30         # effective -inf for masked (padded) key columns


# --------------------------------------------------------------------------
# Prologue: row-wise L2 normalize (+ optional scale), emit bf16.
# --------------------------------------------------------------------------
def _normalize_kernel(x_ref, o_ref, *, scale):
    x = x_ref[...].astype(jnp.float32)
    # rsqrt on the EUP; clamping sumsq with eps^2 == clamping the norm with eps.
    inv = lax.rsqrt(jnp.maximum(jnp.sum(x * x, axis=1, keepdims=True), _EPS2))
    o_ref[...] = (x * (inv * scale)).astype(o_ref.dtype)


def _l2_normalize_bf16(x, scale, b_pad, d_pad, row_tile):
    """Zero-pad to (b_pad, d_pad), L2-normalize rows, scale, emit bf16."""
    b, d = x.shape
    if (b_pad, d_pad) != (b, d):
        x = jnp.pad(x, ((0, b_pad - b), (0, d_pad - d)))  # zeros: norms unchanged
    kern = functools.partial(_normalize_kernel, scale=float(scale))
    return pl.pallas_call(
        kern,
        out_shape=jax.ShapeDtypeStruct((b_pad, d_pad), jnp.bfloat16),
        grid_spec=pltpu.PrefetchScalarGridSpec(
            num_scalar_prefetch=0,
            grid=(b_pad // row_tile,),
            in_specs=[pl.BlockSpec((row_tile, d_pad), lambda i: (i, 0))],
            out_specs=pl.BlockSpec((row_tile, d_pad), lambda i: (i, 0)),
        ),
        compiler_params=pltpu.CompilerParams(dimension_semantics=("parallel",)),
    )(x)


# --------------------------------------------------------------------------
# Main kernel: online logsumexp over key tiles + diagonal (positive) term.
# --------------------------------------------------------------------------
def _infonce_kernel(q_ref, k_ref, out_ref, m_sc, l_sc, d_sc,
                    *, b_real, tile, needs_mask):
    qi = pl.program_id(0)            # query-row tile   ("parallel")
    ki = pl.program_id(1)            # key-column tile  ("arbitrary" reduction)
    nk = pl.num_programs(1)

    @pl.when(ki == 0)
    def _init():
        m_sc[...] = jnp.full_like(m_sc, -jnp.inf)
        l_sc[...] = jnp.zeros_like(l_sc)
        d_sc[...] = jnp.zeros_like(d_sc)

    # bf16 MXU matmul, f32 accumulation; contract dim 1 of both operands
    # (no explicit transpose through the XLU).  Inputs are already normalized
    # and the queries carry the folded 1/temperature, so s == logits/T... i.e.
    # s == logits used by the cross-entropy.
    s = lax.dot_general(
        q_ref[...], k_ref[...],
        dimension_numbers=(((1,), (1,)), ((), ())),
        preferred_element_type=jnp.float32)              # (TQ, TK)

    # Positive (diagonal) term, taken from the same s tile (TQ == TK) so it is
    # numerically consistent with the logsumexp accumulation.
    @pl.when(ki == qi)
    def _diag():
        rows = lax.broadcasted_iota(jnp.int32, s.shape, 0)
        cols = lax.broadcasted_iota(jnp.int32, s.shape, 1)
        d_sc[...] = jnp.sum(jnp.where(rows == cols, s, 0.0), axis=1, keepdims=True)

    def _lse_update(sv):
        m_prev = m_sc[...]
        m_new = jnp.maximum(m_prev, jnp.max(sv, axis=1, keepdims=True))
        l_sc[...] = (jnp.exp(m_prev - m_new) * l_sc[...]
                     + jnp.sum(jnp.exp(sv - m_new), axis=1, keepdims=True))
        m_sc[...] = m_new

    if needs_mask:
        # Only the LAST key tile can contain padded columns -> mask only there.
        @pl.when(ki == nk - 1)
        def _last():
            col = lax.broadcasted_iota(jnp.int32, s.shape, 1) + ki * tile
            _lse_update(jnp.where(col < b_real, s, _NEG_BIG))

        @pl.when(ki != nk - 1)
        def _inner():
            _lse_update(s)
    else:
        _lse_update(s)

    # Finalize per-row loss: logsumexp_i - logits[i, i].
    @pl.when(ki == nk - 1)
    def _fin():
        out_ref[...] = m_sc[...] + jnp.log(l_sc[...]) - d_sc[...]


# --------------------------------------------------------------------------
# Wrapper.
# --------------------------------------------------------------------------
def _choose_tile(batch, d_pad, vmem_limit):
    if batch <= 256:
        return ((batch + 7) // 8) * 8           # single sublane-aligned tile

    def fits(t):
        # 2 operands x double-buffered x bf16 tile + small f32 stats/output.
        return 2 * 2 * t * d_pad * 2 + 64 * t <= vmem_limit // 2

    if batch >= 1024 and fits(512):
        return 512
    if fits(256):
        return 256
    # TODO(synk): chunk D (inner grid axis accumulating s in a (TQ,TK) scratch)
    # for extremely large embed dims instead of shrinking the tile.
    return 128


def infonce_loss(embeddings, positives, temperature=0.07):
    """embeddings, positives: [B, D]. Returns scalar f32 InfoNCE loss."""
    assert embeddings.shape == positives.shape
    B, D = embeddings.shape
    d_pad = pl.cdiv(D, 128) * 128                # lane-dense last dim

    # Generation-aware VMEM budget: ~100 MiB on v5e/v6e (128 MiB physical),
    # ~48 MiB on v7x (64 MiB physical).
    vmem_cap = 64 * 1024 * 1024
    try:
        vmem_cap = int(getattr(pltpu.get_tpu_info(), "vmem_capacity_bytes", vmem_cap))
    except Exception:
        pass
    vmem_limit = max(32 << 20, min(vmem_cap - (16 << 20), 100 << 20))

    tile = _choose_tile(B, d_pad, vmem_limit)
    b_pad = pl.cdiv(B, tile) * tile
    nq = b_pad // tile
    needs_mask = (b_pad != B)

    # One-shot normalization (keys are NOT re-normalized per query tile);
    # 1/temperature folded into the query scale; bf16 operands for the MXU.
    row_tile = min(tile, 256)
    q = _l2_normalize_bf16(embeddings, 1.0 / float(temperature), b_pad, d_pad, row_tile)
    k = _l2_normalize_bf16(positives, 1.0, b_pad, d_pad, row_tile)

    kernel = functools.partial(
        _infonce_kernel, b_real=B, tile=tile, needs_mask=needs_mask)

    flops = 2 * b_pad * b_pad * d_pad
    bytes_accessed = (1 + nq) * b_pad * d_pad * 2 + b_pad * 4  # keys re-read per q-tile

    # TODO(synk): on v7x with B <= tile the "parallel" axis has extent 1 and one
    # TensorCore idles; split the key axis across cores with a partial (m,l,d)
    # combine for small-batch 2-TC utilization.
    row_losses = pl.pallas_call(
        kernel,
        out_shape=jax.ShapeDtypeStruct((b_pad, 1), jnp.float32),
        grid_spec=pltpu.PrefetchScalarGridSpec(
            num_scalar_prefetch=0,
            grid=(nq, nq),
            in_specs=[
                pl.BlockSpec((tile, d_pad), lambda qi, ki: (qi, 0)),  # queries
                pl.BlockSpec((tile, d_pad), lambda qi, ki: (ki, 0)),  # keys
            ],
            out_specs=pl.BlockSpec((tile, 1), lambda qi, ki: (qi, 0)),
            scratch_shapes=[
                pltpu.VMEM((tile, 1), jnp.float32),   # running max  m
                pltpu.VMEM((tile, 1), jnp.float32),   # running sum  l
                pltpu.VMEM((tile, 1), jnp.float32),   # diag (positive logits)
            ],
        ),
        compiler_params=pltpu.CompilerParams(
            dimension_semantics=("parallel", "arbitrary"),
            vmem_limit_bytes=int(vmem_limit),
        ),
        cost_estimate=pl.CostEstimate(
            flops=flops, transcendentals=b_pad * b_pad, bytes_accessed=bytes_accessed),
    )(q, k)

    # Padded query rows are dropped; mean reduction in the wrapper.
    return jnp.sum(row_losses[:B, 0]) / B


def _infonce_ref(embeddings, positives, temperature=0.07):
    """Pure-JAX reference (mirrors the PyTorch forward)."""
    eps = 1e-12
    e = embeddings.astype(jnp.float32)
    p = positives.astype(jnp.float32)
    e = e / jnp.maximum(jnp.linalg.norm(e, axis=1, keepdims=True), eps)
    p = p / jnp.maximum(jnp.linalg.norm(p, axis=1, keepdims=True), eps)
    logits = (e @ p.T) / temperature
    n = logits.shape[0]
    logprobs = jax.nn.log_softmax(logits, axis=1)
    return -jnp.mean(logprobs[jnp.arange(n), jnp.arange(n)])


if __name__ == "__main__":
    key = jax.random.PRNGKey(0)
    k1, k2, k3, k4 = jax.random.split(key, 4)

    # Small shape consistent with the module (batch=8, embed_dim=32).
    batch, embed_dim = 8, 32
    embeddings = jax.random.normal(k1, (batch, embed_dim), dtype=jnp.float32)
    positives = jax.random.normal(k2, (batch, embed_dim), dtype=jnp.float32)
    loss = infonce_loss(embeddings, positives, temperature=0.07)
    jax.block_until_ready(loss)
    ref = _infonce_ref(embeddings, positives, temperature=0.07)
    # bf16 MXU operands (logits scaled by 1/0.07) -> loosened tolerance.
    assert jnp.allclose(loss, ref, atol=5e-2, rtol=5e-2), (loss, ref)

    # Larger, non-aligned shape: multi-tile grid, padded-key mask on the last
    # key tile, and the diagonal-block positive term.
    b2, d2 = 384, 200
    e2 = jax.random.normal(k3, (b2, d2), dtype=jnp.float32)
    p2 = jax.random.normal(k4, (b2, d2), dtype=jnp.float32)
    loss2 = infonce_loss(e2, p2, temperature=0.07)
    jax.block_until_ready(loss2)
    ref2 = _infonce_ref(e2, p2, temperature=0.07)
    assert jnp.allclose(loss2, ref2, atol=5e-2, rtol=5e-2), (loss2, ref2)

    print("KERNEL_OK")
</pallas_src>

<mosaic_0001>
module attributes {stable_mosaic.version = 11 : i64} {
  func.func @_normalize_kernel(%arg0: i32, %arg1: memref<8x128xf32, #tpu.memory_space<vmem>>, %arg2: memref<8x128xbf16, #tpu.memory_space<vmem>>) attributes {dimension_semantics = [#tpu.dimension_semantics<parallel>], iteration_bounds = array<i64: 1>, scalar_prefetch = 0 : i64, scratch_operands = 0 : i64, tpu.core_type = #tpu.core_type<tc>, window_params = [{transform_indices = @transform_0, window_bounds = array<i64: 8, 128>}, {transform_indices = @transform_1, window_bounds = array<i64: 8, 128>}]} {
    %c0 = arith.constant 0 : index
    %c0_0 = arith.constant 0 : index
    %0 = vector.load %arg1[%c0, %c0_0] : memref<8x128xf32, #tpu.memory_space<vmem>>, vector<8x128xf32>
    %1 = arith.mulf %0, %0 : vector<8x128xf32>
    %cst = arith.constant dense<0.000000e+00> : vector<8xf32>
    %2 = vector.multi_reduction <add>, %1, %cst [1] : vector<8x128xf32> to vector<8xf32>
    %3 = vector.shape_cast %2 : vector<8xf32> to vector<8x1xf32>
    %cst_1 = arith.constant 1.000000e-24 : f32
    %4 = vector.broadcast %cst_1 : f32 to vector<8x1xf32>
    %5 = arith.maximumf %3, %4 : vector<8x1xf32>
    %6 = math.rsqrt %5 : vector<8x1xf32>
    %cst_2 = arith.constant 14.2857141 : f32
    %7 = vector.broadcast %cst_2 : f32 to vector<8x1xf32>
    %8 = arith.mulf %6, %7 : vector<8x1xf32>
    %9 = vector.broadcast %8 : vector<8x1xf32> to vector<8x128xf32>
    %10 = arith.mulf %0, %9 : vector<8x128xf32>
    %11 = arith.truncf %10 : vector<8x128xf32> to vector<8x128xbf16>
    %c0_3 = arith.constant 0 : index
    %c0_4 = arith.constant 0 : index
    %12 = vector.load %arg2[%c0_3, %c0_4] : memref<8x128xbf16, #tpu.memory_space<vmem>>, vector<8x128xbf16>
    tpu.vector_store %arg2[%c0_3, %c0_4], %11 {strides = array<i32>} : memref<8x128xbf16, #tpu.memory_space<vmem>>, vector<8x128xbf16>,
    return
  }
  func.func @transform_0(%arg0: i32) -> (i32, i32) {
    %c0_i32 = arith.constant 0 : i32
    %c0_i32_0 = arith.constant 0 : i32
    return %arg0, %c0_i32 : i32, i32
  }
  func.func @transform_1(%arg0: i32) -> (i32, i32) {
    %c0_i32 = arith.constant 0 : i32
    %c0_i32_0 = arith.constant 0 : i32
    return %arg0, %c0_i32 : i32, i32
  }
}

</mosaic_0001>

<bundles_post_ra>
// kernel: tpu_custom_call.1
= control target key start
LH: loop header
LB: loop body
LE: loop exit
PB: predicated region body
PF: predicated region fallthrough
CT: control target
= control target key end

     0   :  { %6 = vsyncpa [#allocation3], 0  ;;  %s134_s0 = inlined_call_operand.hbm [shape: f32[8,128], index: 0, kind: input, shape index: {}]   ;;  %s135_s1 = inlined_call_operand.hbm [shape: bf16[8,128], index: 1, kind: output, shape index: {}]  }
   0x1   :  { %7 = vsyncpa [#allocation4], 0  ;;  %s98_s6 = smov [#allocation2]   ;;  %s50_s10 = scalar_lea.hbm %s134_s0, 128 }
   0x2   :  { %s14_s7 = sshll.u32 %s98_s6, 4  ;;  %p51_p0 = scmp.ne.s32.totalorder %s134_s0, %s50_s10  ;;  %s15_s7 = int_to_ptr.vmem [resolvable:$true] %s14_s7 }
   0x3   :  { %p54_p1 = scmp.lt.u32.totalorder %s50_s10, %s134_s0 }
   0x5   :  { %p56_p2 = pnand %p54_p1, %p51_p0 }
   0x7   :  { %59 = shalt.err (!%p56_p2)
}
   0x8   :  { %s60_s15 = scalar_lea.vmem %s15_s7, 128  ;;  %p65_p4 = scmp.lt.s32.totalorder %s15_s7, %s15_s7 }
   0x9   :  { %p61_p3 = scmp.ne.s32.totalorder %s15_s7, %s60_s15  ;;  %p66_p5 = scmp.lt.s32.totalorder %s60_s15, %s60_s15 }
   0xb   :  { %p67_p6 = por %p66_p5, %p65_p4 }
   0xd   :  { %p68_p7 = pnand %p67_p6, %p61_p3 }
   0xf   :  { %71 = shalt.err (!%p68_p7)
}
  0x10   :  { %17 = dma.hbm_to_vmem [thread:$0]  %s134_s0, 128, %s15_s7, [#allocation3]  }
  0x11   :  { %94 = dma.done.wait [#allocation3], 128  }
  0x12   :  { %95 = vsyncadd [#allocation3], 4294967168  ;;  %v21_v0 = vld [vmem:[#allocation2] sm:$0xff]  ;;  %s99_s18 = smov [#allocation5]  }
  0x13   :  { %v22_v1 = vmul.f32 %v21_v0, %v21_v0  ;;  %s37_s19 = sshll.u32 %s99_s18, 4  ;;  %s38_s19 = int_to_ptr.vmem [resolvable:$true] %s37_s19 }
  0x14   :  { %s72_s20 = scalar_lea.vmem %s38_s19, 64  ;;  %p77_p9 = scmp.lt.s32.totalorder %s38_s19, %s38_s19 }
  0x15   :  { %23 = vadd.xlane.f32.xlu0 %v22_v1  ;;  %p73_p8 = scmp.ne.s32.totalorder %s38_s19, %s72_s20  ;;  %p78_p10 = scmp.lt.s32.totalorder %s72_s20, %s72_s20 }
  0x17   :  { %p79_p11 = por %p78_p10, %p77_p9 }
  0x19   :  { %p80_p12 = pnand %p79_p11, %p73_p8 }
  0xa2   :  { %v24_v2 = vpop.xlane.xlu0 %23 }
  0xa3   :  { %v25_v3 = vmax.f32 %v24_v2, 1e-24 }
  0xa5   :  { %48 = vrsqrt.f32 %v25_v3 }
  0xaf   :  { %v49_v4 = vpop.eup %48 }
  0xb0   :  { %v27_v5 = vmul.f32 14.285714, %v49_v4 }
  0xb2   :  { %v28_v6 = vmul.f32 %v27_v5, %v21_v0 }
  0xb4   :  { %v29_v7 = vpack.c.bf16 %v28_v6, %v28_v6 }
  0xb6   :  { %30 = vst [vmem:[#allocation5] sm:$0xf] %v29_v7 }
  0xb7   :  { %83 = shalt.err (!%p80_p12)
}
  0xb8   :  { %s84_s22 = scalar_lea.hbm %s135_s1, 64 }
  0xb9   :  { %p85_p13 = scmp.ne.s32.totalorder %s135_s1, %s84_s22  ;;  %p88_p0 = scmp.lt.u32.totalorder %s84_s22, %s135_s1 }
  0xbb   :  { %p90_p1 = pnand %p88_p0, %p85_p13 }
  0xbd   :  { %93 = shalt.err (!%p90_p1)
}
  0xbe   :  { %40 = dma.vmem_to_hbm [thread:$0]  %s38_s19, 64, %s135_s1, [#allocation4]  }
  0xbf   :  { %96 = dma.done.wait [#allocation4], 64  }
  0xc0   :  { %97 = vsyncadd [#allocation4], 4294967232 }
  0xc1   :  { %44 = vsyncpa [#allocation3], 1 }
  0xc2   :  { %45 = vsyncpa [#allocation4], 1 }

</bundles_post_ra>
